<compile_context>
chip_gen: v6e
topology: v6e:2x2x1
jax: 0.10.0
libtpu: 0.0.40
codegen_flags: <defaults>
</compile_context>

<pallas_src>
import jax
import jax.numpy as jnp
from jax.experimental import pallas as pl
from jax.experimental.pallas import tpu as pltpu


def _round_up(n: int, m: int) -> int:
    return ((n + m - 1) // m) * m


def _mlp_kernel(x_ref, w1_ref, b1_ref, w2_ref, b2_ref, o_ref):
    # fc1: [TB, D_in] @ [D_in, H] + [1, H]
    h = jnp.dot(x_ref[...], w1_ref[...], preferred_element_type=jnp.float32)
    h = jnp.maximum(h + b1_ref[...], 0.0)          # ReLU
    # Dropout(p=0.2): identity in eval/inference mode.
    # fc2: [TB, H] @ [H, 2] + [1, 2]
    out = jnp.dot(h, w2_ref[...], preferred_element_type=jnp.float32)
    o_ref[...] = (out + b2_ref[...]).astype(o_ref.dtype)


def basic_champion_predictor(x, w1, b1, w2, b2, *, block_b: int = 2048):
    """x: [B, D_in] f32; w1: [D_in, H]; b1: [1, H]; w2: [H, 2]; b2: [1, 2].

    Returns [B, 2] f32 logits (eval-mode forward, dropout = identity).
    """
    B, D_in = x.shape
    H = w1.shape[1]
    N_out = w2.shape[1]

    # ---- batch tiling ---------------------------------------------------------
    # Large tiles amortize the ~0.35us per-grid-step overhead, but cap TB so
    # big batches give >= 2 grid steps (one per TensorCore on v7x). TB must be
    # a multiple of 8 sublanes, or equal B when the batch is tiny.
    TB = min(int(block_b), _round_up(pl.cdiv(B, 2), 8))
    TB = max(8, (TB // 8) * 8)
    if TB >= B:
        TB = B                      # single full block (block dim == array dim)
    grid = (pl.cdiv(B, TB),)        # ragged last block is masked by Pallas

    flops = 2 * B * (D_in * H + H * N_out)
    bytes_accessed = 4 * (B * D_in + D_in * H + H + H * N_out + N_out + B * N_out)

    def run(dim_sems):
        return pl.pallas_call(
            _mlp_kernel,
            out_shape=jax.ShapeDtypeStruct((B, N_out), jnp.float32),
            grid_spec=pltpu.PrefetchScalarGridSpec(
                num_scalar_prefetch=0,
                grid=grid,
                in_specs=[
                    # x: tiled over batch, auto double-buffered by Pallas.
                    pl.BlockSpec((TB, D_in), lambda i: (i, 0)),
                    # weights / biases: full-array blocks, same index every
                    # step -> stay VMEM-resident, no re-DMA per step.
                    pl.BlockSpec((D_in, H), lambda i: (0, 0)),
                    pl.BlockSpec((1, H), lambda i: (0, 0)),
                    pl.BlockSpec((H, N_out), lambda i: (0, 0)),
                    pl.BlockSpec((1, N_out), lambda i: (0, 0)),
                ],
                # Output keeps its logical width (2): block last dim == full
                # array dim is legal and minimizes HBM writeback traffic.
                out_specs=pl.BlockSpec((TB, N_out), lambda i: (i, 0)),
            ),
            compiler_params=pltpu.CompilerParams(
                dimension_semantics=dim_sems,
                # Above v5e's 16 MiB default scoped VMEM, far below v7x's
                # 64 MiB physical VMEM; tiles here are tiny anyway.
                vmem_limit_bytes=32 << 20,
            ),
            cost_estimate=pl.CostEstimate(
                flops=flops, transcendentals=0, bytes_accessed=bytes_accessed,
            ),
        )(x, w1, b1, w2, b2)

    if grid[0] >= 2:
        # v7x has 2 TensorCores per chip: actually shard the batch grid across
        # them. Fall back to plain "parallel" if this Mosaic build rejects it.
        try:
            return run((pltpu.CORE_PARALLEL,))
        except Exception:
            pass
    return run(("parallel",))


def init_params(key, input_dim, hidden_dim):
    """Deterministic init mimicking nn.Linear's uniform(-1/sqrt(fan_in), 1/sqrt(fan_in))."""
    k1, k2, k3, k4 = jax.random.split(key, 4)
    bound1 = 1.0 / jnp.sqrt(jnp.float32(input_dim))
    bound2 = 1.0 / jnp.sqrt(jnp.float32(hidden_dim))
    # Stored pre-transposed relative to PyTorch's [out, in] convention.
    w1 = jax.random.uniform(k1, (input_dim, hidden_dim), jnp.float32, -bound1, bound1)
    b1 = jax.random.uniform(k2, (1, hidden_dim), jnp.float32, -bound1, bound1)
    w2 = jax.random.uniform(k3, (hidden_dim, 2), jnp.float32, -bound2, bound2)
    b2 = jax.random.uniform(k4, (1, 2), jnp.float32, -bound2, bound2)
    return w1, b1, w2, b2


if __name__ == "__main__":
    key = jax.random.PRNGKey(0)
    k_x, k_x2, k_p = jax.random.split(key, 3)

    batch, input_dim, hidden_dim = 4, 16, 32
    w1, b1, w2, b2 = init_params(k_p, input_dim, hidden_dim)

    # --- small batch (single block, grid=1) -----------------------------------
    x = jax.random.normal(k_x, (batch, input_dim), jnp.float32)
    out = jax.block_until_ready(basic_champion_predictor(x, w1, b1, w2, b2))
    ref = jnp.maximum(x @ w1 + b1, 0.0) @ w2 + b2
    assert out.shape == (batch, 2)
    assert jnp.allclose(out, ref, atol=1e-5, rtol=1e-5), "mismatch vs reference"

    # --- larger ragged batch (grid >= 2, edge-block masking) -------------------
    batch2 = 100
    x2 = jax.random.normal(k_x2, (batch2, input_dim), jnp.float32)
    out2 = jax.block_until_ready(basic_champion_predictor(x2, w1, b1, w2, b2))
    ref2 = jnp.maximum(x2 @ w1 + b1, 0.0) @ w2 + b2
    assert out2.shape == (batch2, 2)
    assert jnp.allclose(out2, ref2, atol=1e-5, rtol=1e-5), "mismatch vs reference (ragged)"

    print("KERNEL_OK")
</pallas_src>

<mosaic_0001>
module attributes {stable_mosaic.version = 11 : i64} {
  func.func @_mlp_kernel(%arg0: i32, %arg1: memref<4x16xf32, #tpu.memory_space<vmem>>, %arg2: memref<16x32xf32, #tpu.memory_space<vmem>>, %arg3: memref<1x32xf32, #tpu.memory_space<vmem>>, %arg4: memref<32x2xf32, #tpu.memory_space<vmem>>, %arg5: memref<1x2xf32, #tpu.memory_space<vmem>>, %arg6: memref<4x2xf32, #tpu.memory_space<vmem>>) attributes {dimension_semantics = [#tpu.dimension_semantics<parallel>], iteration_bounds = array<i64: 1>, scalar_prefetch = 0 : i64, scratch_operands = 0 : i64, tpu.core_type = #tpu.core_type<tc>, window_params = [{transform_indices = @transform_0, window_bounds = array<i64: 4, 16>}, {pipeline_mode = #tpu.pipeline_mode<synchronous>, transform_indices = @transform_1, window_bounds = array<i64: 16, 32>}, {pipeline_mode = #tpu.pipeline_mode<synchronous>, transform_indices = @transform_2, window_bounds = array<i64: 1, 32>}, {pipeline_mode = #tpu.pipeline_mode<synchronous>, transform_indices = @transform_3, window_bounds = array<i64: 32, 2>}, {pipeline_mode = #tpu.pipeline_mode<synchronous>, transform_indices = @transform_4, window_bounds = array<i64: 1, 2>}, {transform_indices = @transform_5, window_bounds = array<i64: 4, 2>}]} {
    %c0 = arith.constant 0 : index
    %c0_0 = arith.constant 0 : index
    %0 = vector.load %arg1[%c0, %c0_0] : memref<4x16xf32, #tpu.memory_space<vmem>>, vector<4x16xf32>
    %c0_1 = arith.constant 0 : index
    %c0_2 = arith.constant 0 : index
    %1 = vector.load %arg2[%c0_1, %c0_2] : memref<16x32xf32, #tpu.memory_space<vmem>>, vector<16x32xf32>
    %cst = arith.constant dense<0.000000e+00> : vector<4x32xf32>
    %2 = tpu.matmul %0, %1, %cst {dimension_numbers = #tpu.dot_dimension_numbers<[1], [0], [0], [1], [0, 0, 1, 1], [], []>} : vector<4x16xf32>, vector<16x32xf32>, vector<4x32xf32> -> vector<4x32xf32>
    %c0_3 = arith.constant 0 : index
    %c0_4 = arith.constant 0 : index
    %3 = vector.load %arg3[%c0_3, %c0_4] : memref<1x32xf32, #tpu.memory_space<vmem>>, vector<1x32xf32>
    %4 = vector.broadcast %3 : vector<1x32xf32> to vector<4x32xf32>
    %5 = arith.addf %2, %4 : vector<4x32xf32>
    %cst_5 = arith.constant 0.000000e+00 : f32
    %6 = vector.broadcast %cst_5 : f32 to vector<4x32xf32>
    %7 = arith.maximumf %5, %6 : vector<4x32xf32>
    %c0_6 = arith.constant 0 : index
    %c0_7 = arith.constant 0 : index
    %8 = vector.load %arg4[%c0_6, %c0_7] : memref<32x2xf32, #tpu.memory_space<vmem>>, vector<32x2xf32>
    %cst_8 = arith.constant dense<0.000000e+00> : vector<4x2xf32>
    %9 = tpu.matmul %7, %8, %cst_8 {dimension_numbers = #tpu.dot_dimension_numbers<[1], [0], [0], [1], [0, 0, 1, 1], [], []>} : vector<4x32xf32>, vector<32x2xf32>, vector<4x2xf32> -> vector<4x2xf32>
    %c0_9 = arith.constant 0 : index
    %c0_10 = arith.constant 0 : index
    %10 = vector.load %arg5[%c0_9, %c0_10] : memref<1x2xf32, #tpu.memory_space<vmem>>, vector<1x2xf32>
    %11 = vector.broadcast %10 : vector<1x2xf32> to vector<4x2xf32>
    %12 = arith.addf %9, %11 : vector<4x2xf32>
    %c0_11 = arith.constant 0 : index
    %c0_12 = arith.constant 0 : index
    %13 = vector.load %arg6[%c0_11, %c0_12] : memref<4x2xf32, #tpu.memory_space<vmem>>, vector<4x2xf32>
    tpu.vector_store %arg6[%c0_11, %c0_12], %12 {strides = array<i32>} : memref<4x2xf32, #tpu.memory_space<vmem>>, vector<4x2xf32>,
    return
  }
  func.func @transform_0(%arg0: i32) -> (i32, i32) {
    %c0_i32 = arith.constant 0 : i32
    %c0_i32_0 = arith.constant 0 : i32
    return %arg0, %c0_i32 : i32, i32
  }
  func.func @transform_1(%arg0: i32) -> (i32, i32) {
    %c0_i32 = arith.constant 0 : i32
    %c0_i32_0 = arith.constant 0 : i32
    %c0_i32_1 = arith.constant 0 : i32
    return %c0_i32, %c0_i32_0 : i32, i32
  }
  func.func @transform_2(%arg0: i32) -> (i32, i32) {
    %c0_i32 = arith.constant 0 : i32
    %c0_i32_0 = arith.constant 0 : i32
    %c0_i32_1 = arith.constant 0 : i32
    return %c0_i32, %c0_i32_0 : i32, i32
  }
  func.func @transform_3(%arg0: i32) -> (i32, i32) {
    %c0_i32 = arith.constant 0 : i32
    %c0_i32_0 = arith.constant 0 : i32
    %c0_i32_1 = arith.constant 0 : i32
    return %c0_i32, %c0_i32_0 : i32, i32
  }
  func.func @transform_4(%arg0: i32) -> (i32, i32) {
    %c0_i32 = arith.constant 0 : i32
    %c0_i32_0 = arith.constant 0 : i32
    %c0_i32_1 = arith.constant 0 : i32
    return %c0_i32, %c0_i32_0 : i32, i32
  }
  func.func @transform_5(%arg0: i32) -> (i32, i32) {
    %c0_i32 = arith.constant 0 : i32
    %c0_i32_0 = arith.constant 0 : i32
    return %arg0, %c0_i32 : i32, i32
  }
}

</mosaic_0001>

<bundles_post_ra>
// kernel: tpu_custom_call.1
= control target key start
LH: loop header
LB: loop body
LE: loop exit
PB: predicated region body
PF: predicated region fallthrough
CT: control target
= control target key end

     0   :  { %v228_v0 = vmov 0.0   ;;  %vm229_vm0 = vmmov 0   ;;  %vm30_vm1 = vcmask 130048   ;;  %vm116_vm2 = vcmask 261120   ;;  %s290_s1 = inlined_call_operand.vmem [shape: f32[16,32], index: 1, kind: input, shape index: {}]   ;;  %s291_s0 = inlined_call_operand.vmem [shape: f32[4,16], index: 0, kind: input, shape index: {}]   ;;  %s292_s3 = inlined_call_operand.vmem [shape: f32[32,2], index: 3, kind: input, shape index: {}]   ;;  %s293_s2 = inlined_call_operand.vmem [shape: f32[1,32], index: 2, kind: input, shape index: {}]   ;;  %s294_s4 = inlined_call_operand.vmem [shape: f32[1,2], index: 4, kind: input, shape index: {}]   ;;  %s295_s5 = inlined_call_operand.vmem [shape: f32[4,2], index: 5, kind: output, shape index: {}]  }
   0x1   :  { %208 = vmatprep.subr.mxu0 %v228_v0  ;;  %v22_v1 = vld [vmem:[%s290_s1 + $0x8] sm:$0xff]  ;;  %v21_v2 = vld [vmem:[%s290_s1] sm:$0xff]  ;;  %212 = vmatprep.mubr.msk.f32.mxu0 %vm229_vm0, %v228_v0  ;;  %v108_v4 = vld [vmem:[%s292_s3 + $0x18] sm:$0xff]  ;;  %vm190_vm3 = vcmask 11264  }
   0x2   :  { %209 = vmatpush3.msra.mxu0 %v22_v1  ;;  %v20_v3 = vld [vmem:[%s291_s0] sm:$0xf]  ;;  %215 = vmatprep.subr.mxu1 %v228_v0  ;;  %v107_v5 = vld [vmem:[%s292_s3 + $0x10] sm:$0xff]  ;;  %v106_v6 = vld [vmem:[%s292_s3 + $0x8] sm:$0xff] }
   0x3   :  { %210 = vmatprep.subr.mxu0 %v228_v0  ;;  %216 = vmatpush3.msra.mxu1 %v108_v4  ;;  %v105_v7 = vld [vmem:[%s292_s3] sm:$0xff] }
   0x4   :  { %211 = vmatpush3.msra.mxu0 %v21_v2  ;;  %217 = vmatprep.subr.mxu1 %v228_v0  ;;  %v196_v8 = vld [vmem:[%s293_s2] ss:$0 sm:$0xff] }
   0x5   :  { %213 = vmatmul.mubr.msk.f32.vlgmr.msra.gmra.mxu0 %vm30_vm1, %v20_v3  ;;  %223 = vmatprep.mubr.msk.f32.mxu1 %vm229_vm0, %v228_v0  ;;  %v198_v13 = vld [vmem:[%s294_s4] ss:$0 sm:$0xff] }
   0x6   :  { %218 = vmatpush3.msra.mxu1 %v107_v5 }
   0x7   :  { %219 = vmatprep.subr.mxu1 %v228_v0 }
   0x8   :  { %220 = vmatpush3.msra.mxu1 %v106_v6 }
   0x9   :  { %221 = vmatprep.subr.mxu1 %v228_v0 }
   0xa   :  { %222 = vmatpush3.msra.mxu1 %v105_v7 }
  0xc5   :  { %v100_v9 = vpop.f32.mrf.mxu0 }
  0xc6   :  { %v101_v10 = vadd.f32 %v196_v8, %v100_v9 }
  0xc7   :  { %v214_v11 = vpop.f32.mrf.mxu0 }
  0xc8   :  { %v104_v12 = vmax.f32 %v101_v10, 0.0 }
  0xca   :  { %224 = vmatmul.mubr.msk.f32.vlgmr.msra.gmra.mxu1 %vm116_vm2, %v104_v12 }
 0x18a   :  { %v186_v14 = vpop.f32.mrf.mxu1 }
 0x18b   :  { %v187_v15 = vadd.f32 %v198_v13, %v186_v14 }
 0x18c   :  { %v225_v16 = vpop.f32.mrf.mxu1 }
 0x18d   :  { %191 = vst.msk [vmem:[%s295_s5] sm:$0xf] %vm190_vm3, %v187_v15 }

</bundles_post_ra>
